<compile_context>
chip_gen: v7x
topology: tpu7x:2x2x1
jax: 0.10.0
libtpu: 0.0.40
codegen_flags: <defaults>
</compile_context>

<pallas_src>
import jax
import jax.numpy as jnp
from jax import lax
from jax.experimental import pallas as pl
from jax.experimental.pallas import tpu as pltpu

P_DROP = 0.4
KEEP = 1.0 - P_DROP
_KEEP_THRESH_24 = int(KEEP * (1 << 24))  # keep iff low-24 hash bits < threshold


def autoencoder_kernel(seed_ref, x_ref, w_ref, enc_ref, rec_ref):
    # seed_ref: SMEM (1,) int32
    # x_ref:   (TB, INP)  bf16
    # w_ref:   (OUT, INP) bf16   (single copy, resident across the batch grid)
    # enc_ref: (TB, OUT)  f32
    # rec_ref: (TB, INP)  f32
    x = x_ref[...]
    w = w_ref[...]

    # encoded_pre = x @ W.T : contract x dim 1 with w dim 1 -> (TB, OUT), f32 acc.
    enc = lax.dot_general(
        x, w, (((1,), (1,)), ((), ())), preferred_element_type=jnp.float32
    )

    tb, out = enc.shape  # static block dims

    # --- dropout(p=0.4), training mode ---------------------------------------
    # Counter-based hash RNG: unique global linear index per element so every
    # batch tile gets an independent mask (no per-tile repetition bias).
    row = lax.broadcasted_iota(jnp.int32, (tb, out), 0) + pl.program_id(0) * tb
    col = lax.broadcasted_iota(jnp.int32, (tb, out), 1)
    h = (row * jnp.int32(out) + col).astype(jnp.uint32)
    h = h + seed_ref[0].astype(jnp.uint32) * jnp.uint32(0x9E3779B9)
    # lowbias32-style mix (xor-shift-multiply), all plain VPU int ops.
    h = h ^ (h >> jnp.uint32(16))
    h = h * jnp.uint32(0x7FEB352D)
    h = h ^ (h >> jnp.uint32(15))
    h = h * jnp.uint32(0x846CA68B)
    h = h ^ (h >> jnp.uint32(16))
    bits24 = (h & jnp.uint32(0x00FFFFFF)).astype(jnp.int32)
    keep = bits24 < jnp.int32(_KEEP_THRESH_24)

    enc_d = jnp.where(keep, enc * jnp.float32(1.0 / KEEP), jnp.float32(0.0))
    enc_ref[...] = enc_d.astype(enc_ref.dtype)

    # reconstructed = encoded_dropped @ W : contract dim 1 with w dim 0 -> (TB, INP)
    rec = lax.dot_general(
        enc_d.astype(jnp.bfloat16), w, (((1,), (0,)), ((), ())),
        preferred_element_type=jnp.float32,
    )
    rec_ref[...] = rec.astype(rec_ref.dtype)


def _pick_block_b(batch):
    # Prefer 256-multiples (v6e/v7x MXU geometry); fall back to 128 (v5e) or to
    # a single whole-batch tile if nothing divides evenly.
    for tb in (512, 256, 128):
        if batch % tb == 0:
            return tb
    return batch


def autoencoder_forward(x, w, seed=0, block_b=None):
    """x: (B, INP) f32, w: (OUT, INP) f32 -> (encoded (B, OUT) f32, reconstructed (B, INP) f32)."""
    B, INP = x.shape
    OUT, INP2 = w.shape
    assert INP == INP2, "weight shape must be (out, inp)"

    if block_b is None:
        block_b = _pick_block_b(B)
    assert B % block_b == 0
    grid = (B // block_b,)

    # bf16 operands for the MXU (f32 accumulation inside the kernel); this also
    # halves weight/activation HBM + VMEM bytes.
    x_bf = x.astype(jnp.bfloat16)
    w_bf = w.astype(jnp.bfloat16)
    seed_arr = jnp.asarray([seed], dtype=jnp.int32)

    # VMEM budget: double-buffered x/enc/rec tiles + resident bf16 weight + headroom.
    vmem_needed = (
        2 * block_b * INP * 2      # x tile (bf16), double-buffered
        + 2 * OUT * INP * 2        # weight (bf16), budget 2 bufs conservatively
        + 2 * block_b * OUT * 4    # enc tile (f32), double-buffered
        + 2 * block_b * INP * 4    # rec tile (f32), double-buffered
        + (4 << 20)                # mask/temporaries headroom
    )
    vmem_limit = int(min(max(vmem_needed, 16 << 20), 64 << 20))  # v7x-safe cap

    cost = pl.CostEstimate(
        flops=4 * B * INP * OUT,            # two (B,INP)x(INP,OUT)-sized matmuls
        transcendentals=0,
        bytes_accessed=2 * (B * INP + OUT * INP) + 4 * (B * OUT + B * INP),
    )

    enc, rec = pl.pallas_call(
        autoencoder_kernel,
        out_shape=(
            jax.ShapeDtypeStruct((B, OUT), jnp.float32),
            jax.ShapeDtypeStruct((B, INP), jnp.float32),
        ),
        grid=grid,
        in_specs=[
            pl.BlockSpec(memory_space=pltpu.MemorySpace.SMEM),       # seed scalar
            pl.BlockSpec((block_b, INP), lambda i: (i, 0)),          # x tile
            pl.BlockSpec((OUT, INP), lambda i: (0, 0)),              # weight (resident)
        ],
        out_specs=(
            pl.BlockSpec((block_b, OUT), lambda i: (i, 0)),          # encoded tile
            pl.BlockSpec((block_b, INP), lambda i: (i, 0)),          # reconstructed tile
        ),
        compiler_params=pltpu.CompilerParams(
            dimension_semantics=("parallel",),
            vmem_limit_bytes=vmem_limit,
        ),
        cost_estimate=cost,
    )(seed_arr, x_bf, w_bf)
    return enc, rec


if __name__ == "__main__":
    key = jax.random.PRNGKey(0)
    k_x, k_w = jax.random.split(key)

    B, INP, OUT = 8, 128, 128  # small, tile-aligned shapes
    x = jax.random.normal(k_x, (B, INP), dtype=jnp.float32)
    # torch.nn.init.normal_(weight): standard normal, shape (OUT, INP)
    w = jax.random.normal(k_w, (OUT, INP), dtype=jnp.float32)

    enc, rec = autoencoder_forward(x, w, seed=0)
    jax.block_until_ready((enc, rec))

    # --- sanity checks against matching-precision JAX references -------------
    x_bf = x.astype(jnp.bfloat16)
    w_bf = w.astype(jnp.bfloat16)
    enc_pre = jnp.dot(x_bf, w_bf.T, preferred_element_type=jnp.float32)

    # Dropout mask is kernel-internal; infer kept entries from non-zeros
    # (exact zeros of a random bf16 matmul are vanishingly unlikely).
    kept = enc != 0.0
    keep_rate = float(jnp.mean(kept.astype(jnp.float32)))
    assert 0.45 < keep_rate < 0.75, f"keep rate {keep_rate} far from {KEEP}"

    # Kept entries must equal pre-dropout values scaled by 1/0.6.
    assert jnp.allclose(
        jnp.where(kept, enc, 0.0),
        jnp.where(kept, enc_pre / KEEP, 0.0),
        rtol=1e-2, atol=1e-2,
    )
    # Reconstruction must equal (dropped encoded) @ W (bf16 operands, f32 acc).
    rec_ref = jnp.dot(enc.astype(jnp.bfloat16), w_bf, preferred_element_type=jnp.float32)
    assert jnp.allclose(rec, rec_ref, rtol=1e-2, atol=1e-2)

    print("KERNEL_OK")
</pallas_src>

<mosaic_0001>
module attributes {stable_mosaic.version = 11 : i64} {
  func.func @autoencoder_kernel(%arg0: i32, %arg1: memref<1xi32, #tpu.memory_space<smem>>, %arg2: memref<8x128xbf16, #tpu.memory_space<vmem>>, %arg3: memref<128x128xbf16, #tpu.memory_space<vmem>>, %arg4: memref<8x128xf32, #tpu.memory_space<vmem>>, %arg5: memref<8x128xf32, #tpu.memory_space<vmem>>) attributes {dimension_semantics = [#tpu.dimension_semantics<parallel>], iteration_bounds = array<i64: 1>, scalar_prefetch = 0 : i64, scratch_operands = 0 : i64, tpu.core_type = #tpu.core_type<tc>, window_params = [{transform_indices = @transform_0, window_bounds = array<i64: 1>}, {transform_indices = @transform_1, window_bounds = array<i64: 8, 128>}, {pipeline_mode = #tpu.pipeline_mode<synchronous>, transform_indices = @transform_2, window_bounds = array<i64: 128, 128>}, {transform_indices = @transform_3, window_bounds = array<i64: 8, 128>}, {transform_indices = @transform_4, window_bounds = array<i64: 8, 128>}]} {
    %c0 = arith.constant 0 : index
    %c0_0 = arith.constant 0 : index
    %0 = vector.load %arg2[%c0, %c0_0] : memref<8x128xbf16, #tpu.memory_space<vmem>>, vector<8x128xbf16>
    %c0_1 = arith.constant 0 : index
    %c0_2 = arith.constant 0 : index
    %1 = vector.load %arg3[%c0_1, %c0_2] : memref<128x128xbf16, #tpu.memory_space<vmem>>, vector<128x128xbf16>
    %cst = arith.constant dense<0.000000e+00> : vector<8x128xf32>
    %2 = tpu.matmul %0, %1, %cst {dimension_numbers = #tpu.dot_dimension_numbers<[1], [1], [0], [0], [0, 0, 1, 0], [], []>} : vector<8x128xbf16>, vector<128x128xbf16>, vector<8x128xf32> -> vector<8x128xf32>
    %3 = tpu.iota {dimensions = array<i32: 0>} : vector<8x128xi32>
    %c8_i32 = arith.constant 8 : i32
    %4 = arith.muli %arg0, %c8_i32 : i32
    %5 = vector.broadcast %4 : i32 to vector<8x128xi32>
    %6 = arith.addi %3, %5 : vector<8x128xi32>
    %7 = tpu.iota {dimensions = array<i32: 1>} : vector<8x128xi32>
    %c128_i32 = arith.constant 128 : i32
    %8 = vector.broadcast %c128_i32 : i32 to vector<8x128xi32>
    %9 = arith.muli %6, %8 : vector<8x128xi32>
    %10 = arith.addi %9, %7 : vector<8x128xi32>
    %c0_3 = arith.constant 0 : index
    %11 = memref.load %arg1[%c0_3] : memref<1xi32, #tpu.memory_space<smem>>
    %c-1640531527_i32 = arith.constant -1640531527 : i32
    %12 = arith.muli %11, %c-1640531527_i32 : i32
    %13 = vector.broadcast %12 : i32 to vector<8x128xi32>
    %14 = arith.addi %10, %13 : vector<8x128xi32>
    %c16_i32 = arith.constant 16 : i32
    %15 = vector.broadcast %c16_i32 : i32 to vector<8x128xi32>
    %16 = arith.shrui %14, %15 : vector<8x128xi32>
    %17 = arith.xori %14, %16 : vector<8x128xi32>
    %c2146121005_i32 = arith.constant 2146121005 : i32
    %18 = vector.broadcast %c2146121005_i32 : i32 to vector<8x128xi32>
    %19 = arith.muli %17, %18 : vector<8x128xi32>
    %c15_i32 = arith.constant 15 : i32
    %20 = vector.broadcast %c15_i32 : i32 to vector<8x128xi32>
    %21 = arith.shrui %19, %20 : vector<8x128xi32>
    %22 = arith.xori %19, %21 : vector<8x128xi32>
    %c-2073254261_i32 = arith.constant -2073254261 : i32
    %23 = vector.broadcast %c-2073254261_i32 : i32 to vector<8x128xi32>
    %24 = arith.muli %22, %23 : vector<8x128xi32>
    %c16_i32_4 = arith.constant 16 : i32
    %25 = vector.broadcast %c16_i32_4 : i32 to vector<8x128xi32>
    %26 = arith.shrui %24, %25 : vector<8x128xi32>
    %27 = arith.xori %24, %26 : vector<8x128xi32>
    %c16777215_i32 = arith.constant 16777215 : i32
    %28 = vector.broadcast %c16777215_i32 : i32 to vector<8x128xi32>
    %29 = arith.andi %27, %28 : vector<8x128xi32>
    %c10066329_i32 = arith.constant 10066329 : i32
    %30 = vector.broadcast %c10066329_i32 : i32 to vector<8x128xi32>
    %31 = arith.cmpi slt, %29, %30 : vector<8x128xi32>
    %cst_5 = arith.constant 1.66666663 : f32
    %32 = vector.broadcast %cst_5 : f32 to vector<8x128xf32>
    %33 = arith.mulf %2, %32 : vector<8x128xf32>
    %cst_6 = arith.constant 0.000000e+00 : f32
    %34 = vector.broadcast %cst_6 : f32 to vector<8x128xf32>
    %35 = arith.select %31, %33, %34 : vector<8x128xi1>, vector<8x128xf32>
    %c0_7 = arith.constant 0 : index
    %c0_8 = arith.constant 0 : index
    %36 = vector.load %arg4[%c0_7, %c0_8] : memref<8x128xf32, #tpu.memory_space<vmem>>, vector<8x128xf32>
    tpu.vector_store %arg4[%c0_7, %c0_8], %35 {strides = array<i32>} : memref<8x128xf32, #tpu.memory_space<vmem>>, vector<8x128xf32>,
    %37 = arith.truncf %35 : vector<8x128xf32> to vector<8x128xbf16>
    %cst_9 = arith.constant dense<0.000000e+00> : vector<8x128xf32>
    %38 = tpu.matmul %37, %1, %cst_9 {dimension_numbers = #tpu.dot_dimension_numbers<[1], [0], [0], [1], [0, 0, 1, 1], [], []>} : vector<8x128xbf16>, vector<128x128xbf16>, vector<8x128xf32> -> vector<8x128xf32>
    %c0_10 = arith.constant 0 : index
    %c0_11 = arith.constant 0 : index
    %39 = vector.load %arg5[%c0_10, %c0_11] : memref<8x128xf32, #tpu.memory_space<vmem>>, vector<8x128xf32>
    tpu.vector_store %arg5[%c0_10, %c0_11], %38 {strides = array<i32>} : memref<8x128xf32, #tpu.memory_space<vmem>>, vector<8x128xf32>,
    return
  }
  func.func @transform_0(%arg0: i32) -> i32 {
    %c0_i32 = arith.constant 0 : i32
    %c0_i32_0 = arith.constant 0 : i32
    return %c0_i32 : i32
  }
  func.func @transform_1(%arg0: i32) -> (i32, i32) {
    %c0_i32 = arith.constant 0 : i32
    %c0_i32_0 = arith.constant 0 : i32
    return %arg0, %c0_i32 : i32, i32
  }
  func.func @transform_2(%arg0: i32) -> (i32, i32) {
    %c0_i32 = arith.constant 0 : i32
    %c0_i32_0 = arith.constant 0 : i32
    %c0_i32_1 = arith.constant 0 : i32
    return %c0_i32, %c0_i32_0 : i32, i32
  }
  func.func @transform_3(%arg0: i32) -> (i32, i32) {
    %c0_i32 = arith.constant 0 : i32
    %c0_i32_0 = arith.constant 0 : i32
    return %arg0, %c0_i32 : i32, i32
  }
  func.func @transform_4(%arg0: i32) -> (i32, i32) {
    %c0_i32 = arith.constant 0 : i32
    %c0_i32_0 = arith.constant 0 : i32
    return %arg0, %c0_i32 : i32, i32
  }
}

</mosaic_0001>

<bundles_post_ra>
// kernel: tpu_custom_call.1
= control target key start
LH: loop header
LB: loop body
LE: loop exit
PB: predicated region body
PF: predicated region fallthrough
CT: control target
= control target key end

     0   :  { %11 = vsyncpa [#allocation4], 0  ;;  %s521_s0 = inlined_call_operand.<no memory space> [shape: s32[1], index: 0, kind: input, shape index: {}]   ;;  %s522_s1 = inlined_call_operand.hbm [shape: bf16[8,128], index: 1, kind: input, shape index: {}]   ;;  %s523_s2 = inlined_call_operand.hbm [shape: bf16[128,128], index: 2, kind: input, shape index: {}]   ;;  %s524_s3 = inlined_call_operand.hbm [shape: f32[8,128], index: 3, kind: output, shape index: {0}]   ;;  %s525_s4 = inlined_call_operand.hbm [shape: f32[8,128], index: 4, kind: output, shape index: {1}]  }
   0x1   :  { %12 = vsyncpa [#allocation7], 0 }
   0x2   :  { %13 = vsyncpa [#allocation5], 0 }
   0x3   :  { %14 = vsyncpa [#allocation10], 0  ;;  %s430_s15 = smov [#allocation3]   ;;  %s431_s17 = smov [#allocation6]  }
   0x4   :  { %s23_s16 = sshll.u32 %s430_s15, 4  ;;  %s32_s18 = sshll.u32 %s431_s17, 4  ;;  %s24_s16 = int_to_ptr.vmem [resolvable:$true] %s23_s16  ;;  %s463_s18 = int_to_ptr.vmem [resolvable:$true] %s32_s18 }
   0x5   :  { %s334_s21 = scalar_lea.hbm %s522_s1, 64 }
   0x6   :  { %p335_p0 = scmp.ne.s32.totalorder %s522_s1, %s334_s21  ;;  %p338_p1 = scmp.lt.u32.totalorder %s334_s21, %s522_s1 }
   0x8   :  { %p340_p2 = pnand %p338_p1, %p335_p0 }
   0xa   :  { %343 = shalt.err (!%p340_p2)
}
   0xb   :  { %s344_s26 = scalar_lea.vmem %s24_s16, 64  ;;  %p349_p4 = scmp.lt.s32.totalorder %s24_s16, %s24_s16 }
   0xc   :  { %p345_p3 = scmp.ne.s32.totalorder %s24_s16, %s344_s26  ;;  %p350_p5 = scmp.lt.s32.totalorder %s344_s26, %s344_s26 }
   0xe   :  { %p351_p6 = por %p350_p5, %p349_p4 }
  0x10   :  { %p352_p7 = pnand %p351_p6, %p345_p3 }
  0x12   :  { %355 = shalt.err (!%p352_p7)
}
  0x13   :  { %26 = dma.hbm_to_vmem [thread:$0]  %s522_s1, 64, %s24_s16, [#allocation4]  }
  0x14   :  { %s356_s5 = scalar_lea.hbm %s523_s2, 1024 }
  0x15   :  { %p357_p8 = scmp.ne.s32.totalorder %s523_s2, %s356_s5  ;;  %p360_p9 = scmp.lt.u32.totalorder %s356_s5, %s523_s2 }
  0x17   :  { %p362_p10 = pnand %p360_p9, %p357_p8 }
  0x19   :  { %365 = shalt.err (!%p362_p10)
}
  0x1a   :  { %s366_s10 = scalar_lea.vmem %s463_s18, 1024  ;;  %p371_p12 = scmp.lt.s32.totalorder %s463_s18, %s463_s18 }
  0x1b   :  { %p367_p11 = scmp.ne.s32.totalorder %s463_s18, %s366_s10  ;;  %p372_p13 = scmp.lt.s32.totalorder %s366_s10, %s366_s10 }
  0x1d   :  { %p373_p0 = por %p372_p13, %p371_p12 }
  0x1f   :  { %p374_p1 = pnand %p373_p0, %p367_p11 }
  0x21   :  { %377 = shalt.err (!%p374_p1)
}
  0x22   :  { %s432_s1 = smov 64   ;;  %s433_s11 = smov 4  }
  0x23   :  { %38 = dma.hbm_to_vmem [thread:$0]  %s523_s2, 1024, %s463_s18, [#allocation7], %s432_s1, %s432_s1, %s433_s11  }
  0x24   :  { %422 = dma.done.wait [#allocation4], 64  }
  0x25   :  { %423 = vsyncadd [#allocation4], 4294967232 }
  0x26   :  { %424 = dma.done.wait [#allocation7], 1024  }
  0x27   :  { %425 = vsyncadd [#allocation7], 4294966272  ;;  %v434_v0 = vmov 0.0   ;;  %vm435_vm0 = vmmov 0   ;;  %v326_v1 = vld [vmem:[#allocation6] sm:$0xff]   ;;  %v327_v2 = vld [vmem:[#allocation6 + $0x8] sm:$0xff]   ;;  %v151_v10 = vlaneseq }
  0x28   :  { %278 = vmatprep.subr.bf16.mxu0 %v434_v0  ;;  %294 = vmatprep.mubr.msk.bf16.mxu0 %vm435_vm0, %v434_v0  ;;  %v328_v3 = vld [vmem:[#allocation6 + $0x10] sm:$0xff]   ;;  %v329_v4 = vld [vmem:[#allocation6 + $0x18] sm:$0xff]   ;;  %v330_v5 = vld [vmem:[#allocation6 + $0x20] sm:$0xff]   ;;  %s161_s15 = smul.u32 2654435769, %s521_s0  ;;  %s436_s0 = smov [#allocation8]  }
  0x29   :  { %298 = vmatprep.subr.bf16.mxu1 %v434_v0  ;;  %314 = vmatprep.mubr.msk.bf16.mxu1 %vm435_vm0, %v434_v0  ;;  %v331_v6 = vld [vmem:[#allocation6 + $0x28] sm:$0xff]   ;;  %v332_v7 = vld [vmem:[#allocation6 + $0x30] sm:$0xff]   ;;  %v333_v8 = vld [vmem:[#allocation6 + $0x38] sm:$0xff]   ;;  %v152_v11 = vshrl.u32 %v151_v10, 7  ;;  %v157_v12 = vand.u32 127, %v151_v10  ;;  %s225_s16 = sshll.u32 %s436_s0, 4  ;;  %s226_s16 = int_to_ptr.vmem [resolvable:$true] %s225_s16 }
  0x2a   :  { %279 = vmatpush3.bf16.xpose.msra.mxu0 %v326_v1  ;;  %299 = vmatpush3.bf16.msra.mxu1 %v326_v1  ;;  %v46_v9 = vld [vmem:[#allocation3] sm:$0xf]  ;;  %v162_v15 = vstv %s161_s15  ;;  %s378_s17 = scalar_lea.vmem %s226_s16, 128  ;;  %p383_p3 = scmp.lt.s32.totalorder %s226_s16, %s226_s16 }
  0x2b   :  { %280 = vmatprep.subr.bf16.mxu0 %v434_v0  ;;  %300 = vmatprep.subr.bf16.mxu1 %v434_v0  ;;  %v158_v13 = vmul.u32 128, %v152_v11  ;;  %p379_p2 = scmp.ne.s32.totalorder %s226_s16, %s378_s17  ;;  %p384_p4 = scmp.lt.s32.totalorder %s378_s17, %s378_s17 }
  0x2d   :  { %v159_v14 = vadd.s32 %v158_v13, %v157_v12  ;;  %p385_p5 = por %p384_p4, %p383_p3 }
  0x2e   :  { %301 = vmatpush3.bf16.msra.mxu1 %v327_v2 }
  0x2f   :  { %302 = vmatprep.subr.bf16.mxu1 %v434_v0  ;;  %v163_v16 = vadd.s32 %v162_v15, %v159_v14  ;;  %p386_p6 = pnand %p385_p5, %p379_p2 }
  0x31   :  { %v164_v17 = vshrl.u32 %v163_v16, 16 }
  0x32   :  { %281 = vmatpush3.bf16.xpose.msra.mxu0 %v327_v2  ;;  %303 = vmatpush3.bf16.msra.mxu1 %v328_v3 }
  0x33   :  { %282 = vmatprep.subr.bf16.mxu0 %v434_v0  ;;  %304 = vmatprep.subr.bf16.mxu1 %v434_v0  ;;  %v165_v18 = vxor.u32 %v164_v17, %v163_v16 }
  0x35   :  { %v166_v19 = vmul.u32 2146121005, %v165_v18 }
  0x36   :  { %305 = vmatpush3.bf16.msra.mxu1 %v329_v4 }
  0x37   :  { %306 = vmatprep.subr.bf16.mxu1 %v434_v0  ;;  %v167_v20 = vshrl.u32 %v166_v19, 15 }
  0x39   :  { %v168_v21 = vxor.u32 %v167_v20, %v166_v19 }
  0x3a   :  { %283 = vmatpush3.bf16.xpose.msra.mxu0 %v328_v3  ;;  %307 = vmatpush3.bf16.msra.mxu1 %v330_v5 }
  0x3b   :  { %284 = vmatprep.subr.bf16.mxu0 %v434_v0  ;;  %308 = vmatprep.subr.bf16.mxu1 %v434_v0  ;;  %v169_v22 = vmul.u32 2221713035, %v168_v21 }
  0x3d   :  { %v170_v23 = vshrl.u32 %v169_v22, 16 }
  0x3e   :  { %309 = vmatpush3.bf16.msra.mxu1 %v331_v6 }
  0x3f   :  { %310 = vmatprep.subr.bf16.mxu1 %v434_v0  ;;  %v171_v24 = vxor.u32 %v170_v23, %v169_v22 }
  0x41   :  { %v172_v25 = vand.u32 16777215, %v171_v24 }
  0x42   :  { %285 = vmatpush3.bf16.xpose.msra.mxu0 %v329_v4  ;;  %311 = vmatpush3.bf16.msra.mxu1 %v332_v7 }
  0x43   :  { %286 = vmatprep.subr.bf16.mxu0 %v434_v0  ;;  %312 = vmatprep.subr.bf16.mxu1 %v434_v0  ;;  %vm173_vm1 = vcmp.lt.s32.totalorder %v172_v25, 10066329 }
  0x44   :  { %vm257_vm2 = vmpackc.low %vm173_vm1, %vm173_vm1 }
  0x46   :  { %313 = vmatpush3.bf16.msra.mxu1 %v333_v8 }
  0x4a   :  { %287 = vmatpush3.bf16.xpose.msra.mxu0 %v330_v5 }
  0x4b   :  { %288 = vmatprep.subr.bf16.mxu0 %v434_v0 }
  0x52   :  { %289 = vmatpush3.bf16.xpose.msra.mxu0 %v331_v6 }
  0x53   :  { %290 = vmatprep.subr.bf16.mxu0 %v434_v0 }
  0x5a   :  { %291 = vmatpush3.bf16.xpose.msra.mxu0 %v332_v7 }
  0x5b   :  { %292 = vmatprep.subr.bf16.mxu0 %v434_v0 }
  0x62   :  { %293 = vmatpush3.bf16.xpose.msra.mxu0 %v333_v8 }
  0x69   :  { %295 = vmatmul.mubr.bf16.vlgmr.msra.gmra.mrb[0].mxu0 %v46_v9 }
 0x13c   :  { %v145_v26 = vpop.f32.mrb[0].mxu0 }
 0x13d   :  { %v174_v27 = vmul.f32 1.6666666, %v145_v26  ;;  %v296_v28 = vpop.f32.mrb[1].mxu0 }
 0x13e   :  { %v148_v29 = vpop.f32.mrb[2].mxu0 }
 0x13f   :  { %v175_v30 = vsel %vm173_vm1, %v174_v27, 0.0  ;;  %v258_v31 = vpack.c.bf16 %v174_v27, %v174_v27  ;;  %v297_v32 = vpop.f32.mrb[3].mxu0 }
 0x140   :  { %176 = vst [vmem:[#allocation8] sm:$0xff] %v175_v30 }
 0x141   :  { %315 = vmatmul.mubr.msk.bf16.vlgmr.msra.gmra.mrb[0].mxu1 %vm257_vm2, %v258_v31 }
 0x142   :  { %389 = shalt.err (!%p386_p6)
}
 0x143   :  { %s390_s20 = scalar_lea.hbm %s524_s3, 128 }
 0x144   :  { %p391_p7 = scmp.ne.s32.totalorder %s524_s3, %s390_s20  ;;  %p394_p8 = scmp.lt.u32.totalorder %s390_s20, %s524_s3 }
 0x146   :  { %p396_p9 = pnand %p394_p8, %p391_p7 }
 0x148   :  { %399 = shalt.err (!%p396_p9)
}
 0x149   :  { %228 = dma.vmem_to_hbm [thread:$0]  %s226_s16, 128, %s524_s3, [#allocation5]  }
 0x14a   :  { %s437_s27 = smov [#allocation9]  }
 0x14b   :  { %s235_s28 = sshll.u32 %s437_s27, 4  ;;  %s236_s28 = int_to_ptr.vmem [resolvable:$true] %s235_s28 }
 0x14c   :  { %s400_s29 = scalar_lea.vmem %s236_s28, 128  ;;  %p405_p11 = scmp.lt.s32.totalorder %s236_s28, %s236_s28 }
 0x14d   :  { %p401_p10 = scmp.ne.s32.totalorder %s236_s28, %s400_s29  ;;  %p406_p12 = scmp.lt.s32.totalorder %s400_s29, %s400_s29 }
 0x14f   :  { %p407_p13 = por %p406_p12, %p405_p11 }
 0x151   :  { %p408_p0 = pnand %p407_p13, %p401_p10 }
 0x214   :  { %v212_v33 = vpop.f32.mrb[0].mxu1 }
 0x215   :  { %218 = vst [vmem:[#allocation9] sm:$0xff] %v212_v33  ;;  %v316_v34 = vpop.f32.mrb[1].mxu1 }
 0x216   :  { %v215_v35 = vpop.f32.mrb[2].mxu1 }
 0x217   :  { %411 = shalt.err (!%p408_p0)
}
 0x218   :  { %s412_s6 = scalar_lea.hbm %s525_s4, 128 }
 0x219   :  { %p413_p1 = scmp.ne.s32.totalorder %s525_s4, %s412_s6  ;;  %p416_p2 = scmp.lt.u32.totalorder %s412_s6, %s525_s4 }
 0x21b   :  { %p418_p3 = pnand %p416_p2, %p413_p1 }
 0x21d   :  { %421 = shalt.err (!%p418_p3)
}
 0x21e   :  { %238 = dma.vmem_to_hbm [thread:$0]  %s236_s28, 128, %s525_s4, [#allocation10]   ;;  %v317_v36 = vpop.f32.mrb[3].mxu1 }
 0x21f   :  { %426 = dma.done.wait [#allocation5], 128  }
 0x220   :  { %427 = vsyncadd [#allocation5], 4294967168 }
 0x221   :  { %428 = dma.done.wait [#allocation10], 128  }
 0x222   :  { %429 = vsyncadd [#allocation10], 4294967168 }
 0x223   :  { %245 = vsyncpa [#allocation4], 1 }
 0x224   :  { %246 = vsyncpa [#allocation7], 1 }
 0x225   :  { %247 = vsyncpa [#allocation5], 1 }
 0x226   :  { %248 = vsyncpa [#allocation10], 1 }

</bundles_post_ra>
